<compile_context>
chip_gen: v5e
topology: v5e:2x2
jax: 0.10.0
libtpu: 0.0.40
codegen_flags: <defaults>
</compile_context>

<pallas_src>
import functools

import jax
import jax.numpy as jnp
from jax import lax
from jax.experimental import pallas as pl
from jax.experimental.pallas import tpu as pltpu


def _round_up(x, m):
    return ((x + m - 1) // m) * m


def _focal_loss_kernel(logits_ref, targets_ref, out_ref,
                       *, gamma, label_smoothing, n_total):
    i = pl.program_id(0)

    x = logits_ref[...].astype(jnp.float32)          # (T, C)  cast in VMEM
    t = targets_ref[...]                             # (T, 1)  int32
    tile_rows, c = x.shape

    # Valid-row mask: last tile may extend past the true batch size.
    row_ids = i * tile_rows + lax.broadcasted_iota(jnp.int32, (tile_rows, 1), 0)
    valid = row_ids < n_total                        # (T, 1) bool

    # clamp(inputs, -10, 10)  (also keeps padded-garbage rows finite)
    x = jnp.clip(x, -10.0, 10.0)

    # Numerically stable log-softmax pieces.
    m = jnp.max(x, axis=-1, keepdims=True)           # (T, 1)
    z = x - m
    ez = jnp.exp(z)                                  # (T, C) -- the one big EUP pass
    lse = jnp.log(jnp.sum(ez, axis=-1, keepdims=True))  # (T, 1)

    # One-hot "gather" of the target column (no dynamic lane gather on TPU).
    class_ids = lax.broadcasted_iota(jnp.int32, (tile_rows, c), 1)
    onehot = (class_ids == t).astype(jnp.float32)    # (T, C)
    z_t = jnp.sum(onehot * z, axis=-1, keepdims=True)  # (T, 1)
    nll = lse - z_t                                  # = -log p_target

    if label_smoothing != 0.0:
        # -mean(logp) = lse - mean(z); avoids materializing logp (T, C).
        smooth = lse - jnp.mean(z, axis=-1, keepdims=True)
        ce = (1.0 - label_smoothing) * nll + label_smoothing * smooth
    else:
        ce = nll

    # pt = exp(-ce): (T, 1) transcendental on the otherwise-idle EUP slot.
    # (For ls == 0 this equals the target softmax prob up to rounding.)
    pt = jnp.exp(-ce)
    pt = jnp.clip(pt, 1e-8, 1.0 - 1e-8)
    one_minus_pt = 1.0 - pt

    g = float(gamma)
    if g == int(g) and 0 <= int(g) <= 8:
        gi = int(g)
        if gi == 0:
            mod = jnp.ones_like(one_minus_pt)
        else:
            mod = one_minus_pt
            for _ in range(gi - 1):
                mod = mod * one_minus_pt
    else:
        # x**g for x in (0, 1): exp(g * log(x)) -- plain EUP ops.
        mod = jnp.exp(g * jnp.log(one_minus_pt))
    focal = mod * ce                                  # (T, 1)

    # Single finiteness check (True for NaN and +/-Inf).
    bad_row = ~(jnp.abs(focal) < jnp.inf)

    zero = jnp.zeros_like(focal)
    focal_sum = jnp.sum(jnp.where(valid, focal, zero), keepdims=True)   # (1, 1)
    ce_sum = jnp.sum(jnp.where(valid, ce, zero), keepdims=True)         # (1, 1)
    bad_sum = jnp.sum(jnp.where(valid & bad_row, jnp.ones_like(focal), zero),
                      keepdims=True)                                    # (1, 1)

    # Pack the three partials into one lane-dense (1, 1, 128) output row:
    # lane 0 = sum(focal), lane 1 = sum(ce), lane 2 = bad count, rest 0.
    lane = lax.broadcasted_iota(jnp.int32, (1, 1, 128), 2)
    row = jnp.where(lane == 0, focal_sum, 0.0)
    row = jnp.where(lane == 1, ce_sum, row)
    row = jnp.where(lane == 2, bad_sum, row)
    out_ref[...] = row


def focal_loss(logits, targets, *, gamma=2.0, label_smoothing=0.0,
               reduction="mean", block_rows=None):
    """logits: (N, C) float (any float dtype), targets: (N,) int -> scalar f32."""
    if reduction not in ("mean", "sum"):
        # TODO(synk): reduction='none' needs a per-row output; not implemented.
        raise NotImplementedError("reduction must be 'mean' or 'sum'")

    n, c = logits.shape
    targets2d = targets.astype(jnp.int32).reshape(n, 1)
    itemsize = jnp.dtype(logits.dtype).itemsize

    # Row-tile sizing: ~4 MiB of VMEM per block (Pallas double-buffers it).
    # Charge both the lane-padded logits row and the lane-padded int32 targets
    # row (128 lanes * 4 B = 512 B) against the budget; round to the dtype's
    # sublane multiple, never (much) larger than the padded N.
    sublane = {4: 8, 2: 16, 1: 32}.get(itemsize, 8)
    row_vmem_bytes = _round_up(c, 128) * itemsize + 128 * 4
    budget_rows = max(sublane, (4 * 1024 * 1024) // row_vmem_bytes)
    cand = [int(budget_rows), _round_up(n, sublane)]
    if block_rows is not None:
        cand.append(int(block_rows))
    tile_n = max(sublane, _round_up(min(cand), sublane))
    num_blocks = pl.cdiv(n, tile_n)

    kernel = functools.partial(
        _focal_loss_kernel,
        gamma=float(gamma),
        label_smoothing=float(label_smoothing),
        n_total=n,
    )

    cost = pl.CostEstimate(
        flops=10 * n * c,
        transcendentals=n * c + n,
        bytes_accessed=n * c * itemsize + n * 4 + num_blocks * 512,
    )

    partials = pl.pallas_call(
        kernel,
        out_shape=jax.ShapeDtypeStruct((num_blocks, 1, 128), jnp.float32),
        grid=(num_blocks,),
        in_specs=[
            pl.BlockSpec((tile_n, c), lambda i: (i, 0)),
            pl.BlockSpec((tile_n, 1), lambda i: (i, 0)),
        ],
        out_specs=pl.BlockSpec((1, 1, 128), lambda i: (i, 0, 0)),
        compiler_params=pltpu.CompilerParams(
            # Fully parallel grid: per-block partial sums, no carried state,
            # so v7x megacore can shard the streaming loop across both TCs.
            dimension_semantics=("parallel",),
            vmem_limit_bytes=48 * 1024 * 1024,
        ),
        cost_estimate=cost,
    )(logits, targets2d)

    # Tiny epilogue in plain JAX: 3-scalar reduce + global NaN/Inf fallback.
    focal_total = jnp.sum(partials[:, 0, 0])
    ce_total = jnp.sum(partials[:, 0, 1])
    bad_total = jnp.sum(partials[:, 0, 2])
    total = jnp.where(bad_total > 0.0, ce_total, focal_total)
    if reduction == "mean":
        total = total / n
    return total


def _focal_loss_ref(logits, targets, *, gamma=2.0, label_smoothing=0.0):
    # Pure-JAX reference (torch-faithful) for sanity checking.
    x = jnp.clip(logits.astype(jnp.float32), -10.0, 10.0)
    logp = jax.nn.log_softmax(x, axis=-1)
    nll = -jnp.take_along_axis(logp, targets[:, None].astype(jnp.int32), axis=-1)[:, 0]
    smooth = -jnp.mean(logp, axis=-1)
    ce = (1.0 - label_smoothing) * nll + label_smoothing * smooth
    pt = jnp.clip(jnp.exp(-ce), 1e-8, 1.0 - 1e-8)
    focal = (1.0 - pt) ** gamma * ce
    bad = jnp.any(jnp.isnan(focal) | jnp.isinf(focal))
    focal = jnp.where(bad, ce, focal)
    return jnp.mean(focal)


if __name__ == "__main__":
    key = jax.random.PRNGKey(0)
    k1, k2 = jax.random.split(key)

    N, C = 22, 16  # deliberately NOT a multiple of the row tile
    logits = jax.random.normal(k1, (N, C), dtype=jnp.float32) * 3.0
    targets = jax.random.randint(k2, (N,), 0, C, dtype=jnp.int32)

    # Default config (gamma=2, ls=0); small tile forces the multi-block
    # parallel-partials path + last-block row masking.
    loss = focal_loss(logits, targets, gamma=2.0, label_smoothing=0.0, block_rows=8)
    loss = jax.block_until_ready(loss)
    ref = _focal_loss_ref(logits, targets, gamma=2.0, label_smoothing=0.0)
    assert jnp.allclose(loss, ref, rtol=1e-5, atol=1e-6), (loss, ref)

    # Non-default config exercises the label-smoothing + non-integer gamma paths.
    loss2 = focal_loss(logits, targets, gamma=1.5, label_smoothing=0.1, block_rows=8)
    loss2 = jax.block_until_ready(loss2)
    ref2 = _focal_loss_ref(logits, targets, gamma=1.5, label_smoothing=0.1)
    assert jnp.allclose(loss2, ref2, rtol=1e-5, atol=1e-6), (loss2, ref2)

    # bf16 logits path: no wrapper-side upcast, kernel casts the VMEM tile.
    logits_bf16 = logits.astype(jnp.bfloat16)
    loss3 = focal_loss(logits_bf16, targets)
    loss3 = jax.block_until_ready(loss3)
    ref3 = _focal_loss_ref(logits_bf16.astype(jnp.float32), targets)
    assert jnp.allclose(loss3, ref3, rtol=1e-4, atol=1e-4), (loss3, ref3)

    # 'sum' reduction path.
    loss4 = focal_loss(logits, targets, reduction="sum", block_rows=8)
    loss4 = jax.block_until_ready(loss4)
    ref4 = _focal_loss_ref(logits, targets) * N
    assert jnp.allclose(loss4, ref4, rtol=1e-5, atol=1e-5), (loss4, ref4)

    print("KERNEL_OK")
</pallas_src>

<mosaic_0001>
module attributes {stable_mosaic.version = 11 : i64} {
  func.func @_focal_loss_kernel(%arg0: i32, %arg1: memref<8x16xf32, #tpu.memory_space<vmem>>, %arg2: memref<8x1xi32, #tpu.memory_space<vmem>>, %arg3: memref<1x1x128xf32, #tpu.memory_space<vmem>>) attributes {dimension_semantics = [#tpu.dimension_semantics<parallel>], iteration_bounds = array<i64: 3>, scalar_prefetch = 0 : i64, scratch_operands = 0 : i64, tpu.core_type = #tpu.core_type<tc>, window_params = [{transform_indices = @transform_0, window_bounds = array<i64: 8, 16>}, {transform_indices = @transform_1, window_bounds = array<i64: 8, 1>}, {transform_indices = @transform_2, window_bounds = array<i64: 1, 1, 128>}]} {
    %c0 = arith.constant 0 : index
    %c0_0 = arith.constant 0 : index
    %0 = vector.load %arg1[%c0, %c0_0] : memref<8x16xf32, #tpu.memory_space<vmem>>, vector<8x16xf32>
    %c0_1 = arith.constant 0 : index
    %c0_2 = arith.constant 0 : index
    %1 = vector.load %arg2[%c0_1, %c0_2] : memref<8x1xi32, #tpu.memory_space<vmem>>, vector<8x1xi32>
    %c8_i32 = arith.constant 8 : i32
    %2 = arith.muli %arg0, %c8_i32 : i32
    %3 = tpu.iota {dimensions = array<i32: 0>} : vector<8x1xi32>
    %4 = vector.broadcast %2 : i32 to vector<8x1xi32>
    %5 = arith.addi %4, %3 : vector<8x1xi32>
    %c22_i32 = arith.constant 22 : i32
    %6 = vector.broadcast %c22_i32 : i32 to vector<8x1xi32>
    %7 = arith.cmpi slt, %5, %6 : vector<8x1xi32>
    %cst = arith.constant -1.000000e+01 : f32
    %cst_3 = arith.constant 1.000000e+01 : f32
    %8 = vector.broadcast %cst : f32 to vector<8x16xf32>
    %9 = arith.maximumf %8, %0 : vector<8x16xf32>
    %10 = vector.broadcast %cst_3 : f32 to vector<8x16xf32>
    %11 = arith.minimumf %10, %9 : vector<8x16xf32>
    %cst_4 = arith.constant dense<0xFF800000> : vector<8xf32>
    %12 = vector.multi_reduction <maximumf>, %11, %cst_4 [1] : vector<8x16xf32> to vector<8xf32>
    %13 = vector.shape_cast %12 : vector<8xf32> to vector<8x1xf32>
    %14 = vector.broadcast %13 : vector<8x1xf32> to vector<8x16xf32>
    %15 = arith.subf %11, %14 : vector<8x16xf32>
    %16 = math.exp %15 : vector<8x16xf32>
    %cst_5 = arith.constant dense<0.000000e+00> : vector<8xf32>
    %17 = vector.multi_reduction <add>, %16, %cst_5 [1] : vector<8x16xf32> to vector<8xf32>
    %18 = vector.shape_cast %17 : vector<8xf32> to vector<8x1xf32>
    %19 = math.log %18 : vector<8x1xf32>
    %20 = tpu.iota {dimensions = array<i32: 1>} : vector<8x16xi32>
    %21 = vector.broadcast %1 : vector<8x1xi32> to vector<8x16xi32>
    %22 = arith.cmpi eq, %20, %21 : vector<8x16xi32>
    %23 = arith.extui %22 : vector<8x16xi1> to vector<8x16xi32>
    %24 = arith.sitofp %23 : vector<8x16xi32> to vector<8x16xf32>
    %25 = arith.mulf %24, %15 : vector<8x16xf32>
    %cst_6 = arith.constant dense<0.000000e+00> : vector<8xf32>
    %26 = vector.multi_reduction <add>, %25, %cst_6 [1] : vector<8x16xf32> to vector<8xf32>
    %27 = vector.shape_cast %26 : vector<8xf32> to vector<8x1xf32>
    %28 = arith.subf %19, %27 : vector<8x1xf32>
    %cst_7 = arith.constant 0.000000e+00 : f32
    %29 = vector.broadcast %cst_7 : f32 to vector<8x1xf32>
    %30 = arith.subf %29, %28 : vector<8x1xf32>
    %31 = math.exp %30 : vector<8x1xf32>
    %cst_8 = arith.constant 9.99999993E-9 : f32
    %cst_9 = arith.constant 1.000000e+00 : f32
    %32 = vector.broadcast %cst_8 : f32 to vector<8x1xf32>
    %33 = arith.maximumf %32, %31 : vector<8x1xf32>
    %34 = vector.broadcast %cst_9 : f32 to vector<8x1xf32>
    %35 = arith.minimumf %34, %33 : vector<8x1xf32>
    %cst_10 = arith.constant 1.000000e+00 : f32
    %36 = vector.broadcast %cst_10 : f32 to vector<8x1xf32>
    %37 = arith.subf %36, %35 : vector<8x1xf32>
    %38 = arith.mulf %37, %37 : vector<8x1xf32>
    %39 = arith.mulf %38, %28 : vector<8x1xf32>
    %40 = math.absf %39 : vector<8x1xf32>
    %cst_11 = arith.constant 0x7F800000 : f32
    %41 = vector.broadcast %cst_11 : f32 to vector<8x1xf32>
    %42 = arith.cmpf olt, %40, %41 : vector<8x1xf32>
    %cst_12 = arith.constant dense<true> : vector<8x1xi1>
    %43 = arith.xori %42, %cst_12 : vector<8x1xi1>
    %cst_13 = arith.constant 0.000000e+00 : f32
    %44 = vector.broadcast %cst_13 : f32 to vector<8x1xf32>
    %45 = arith.select %7, %39, %44 : vector<8x1xi1>, vector<8x1xf32>
    %46 = vector.shape_cast %45 : vector<8x1xf32> to vector<1x8x1xf32>
    %cst_14 = arith.constant dense<0.000000e+00> : vector<1xf32>
    %47 = vector.multi_reduction <add>, %46, %cst_14 [1, 2] : vector<1x8x1xf32> to vector<1xf32>
    %48 = vector.shape_cast %47 : vector<1xf32> to vector<1x1x1xf32>
    %49 = vector.extract %48[0, 0, 0] : f32 from vector<1x1x1xf32>
    %50 = vector.broadcast %49 : f32 to vector<1x1xf32>
    %51 = arith.select %7, %28, %44 : vector<8x1xi1>, vector<8x1xf32>
    %52 = vector.shape_cast %51 : vector<8x1xf32> to vector<1x8x1xf32>
    %cst_15 = arith.constant dense<0.000000e+00> : vector<1xf32>
    %53 = vector.multi_reduction <add>, %52, %cst_15 [1, 2] : vector<1x8x1xf32> to vector<1xf32>
    %54 = vector.shape_cast %53 : vector<1xf32> to vector<1x1x1xf32>
    %55 = vector.extract %54[0, 0, 0] : f32 from vector<1x1x1xf32>
    %56 = vector.broadcast %55 : f32 to vector<1x1xf32>
    %57 = arith.andi %7, %43 : vector<8x1xi1>
    %cst_16 = arith.constant 1.000000e+00 : f32
    %58 = vector.broadcast %cst_16 : f32 to vector<8x1xf32>
    %59 = arith.select %57, %58, %44 : vector<8x1xi1>, vector<8x1xf32>
    %60 = vector.shape_cast %59 : vector<8x1xf32> to vector<1x8x1xf32>
    %cst_17 = arith.constant dense<0.000000e+00> : vector<1xf32>
    %61 = vector.multi_reduction <add>, %60, %cst_17 [1, 2] : vector<1x8x1xf32> to vector<1xf32>
    %62 = vector.shape_cast %61 : vector<1xf32> to vector<1x1x1xf32>
    %63 = vector.extract %62[0, 0, 0] : f32 from vector<1x1x1xf32>
    %64 = vector.broadcast %63 : f32 to vector<1x1xf32>
    %65 = tpu.iota {dimensions = array<i32: 2>} : vector<1x1x128xi32>
    %c0_i32 = arith.constant 0 : i32
    %66 = vector.broadcast %c0_i32 : i32 to vector<1x1x128xi32>
    %67 = arith.cmpi eq, %65, %66 : vector<1x1x128xi32>
    %cst_18 = arith.constant 0.000000e+00 : f32
    %68 = vector.shape_cast %50 : vector<1x1xf32> to vector<1x1x1xf32>
    %69 = vector.broadcast %68 : vector<1x1x1xf32> to vector<1x1x128xf32>
    %70 = vector.broadcast %cst_18 : f32 to vector<1x1x128xf32>
    %71 = arith.select %67, %69, %70 : vector<1x1x128xi1>, vector<1x1x128xf32>
    %c1_i32 = arith.constant 1 : i32
    %72 = vector.broadcast %c1_i32 : i32 to vector<1x1x128xi32>
    %73 = arith.cmpi eq, %65, %72 : vector<1x1x128xi32>
    %74 = vector.shape_cast %56 : vector<1x1xf32> to vector<1x1x1xf32>
    %75 = vector.broadcast %74 : vector<1x1x1xf32> to vector<1x1x128xf32>
    %76 = arith.select %73, %75, %71 : vector<1x1x128xi1>, vector<1x1x128xf32>
    %c2_i32 = arith.constant 2 : i32
    %77 = vector.broadcast %c2_i32 : i32 to vector<1x1x128xi32>
    %78 = arith.cmpi eq, %65, %77 : vector<1x1x128xi32>
    %79 = vector.shape_cast %64 : vector<1x1xf32> to vector<1x1x1xf32>
    %80 = vector.broadcast %79 : vector<1x1x1xf32> to vector<1x1x128xf32>
    %81 = arith.select %78, %80, %76 : vector<1x1x128xi1>, vector<1x1x128xf32>
    %c0_19 = arith.constant 0 : index
    %c0_20 = arith.constant 0 : index
    %c0_21 = arith.constant 0 : index
    %82 = vector.load %arg3[%c0_19, %c0_20, %c0_21] : memref<1x1x128xf32, #tpu.memory_space<vmem>>, vector<1x1x128xf32>
    tpu.vector_store %arg3[%c0_19, %c0_20, %c0_21], %81 {strides = array<i32>} : memref<1x1x128xf32, #tpu.memory_space<vmem>>, vector<1x1x128xf32>,
    return
  }
  func.func @transform_0(%arg0: i32) -> (i32, i32) {
    %c0_i32 = arith.constant 0 : i32
    %c0_i32_0 = arith.constant 0 : i32
    return %arg0, %c0_i32 : i32, i32
  }
  func.func @transform_1(%arg0: i32) -> (i32, i32) {
    %c0_i32 = arith.constant 0 : i32
    %c0_i32_0 = arith.constant 0 : i32
    return %arg0, %c0_i32 : i32, i32
  }
  func.func @transform_2(%arg0: i32) -> (i32, i32, i32) {
    %c0_i32 = arith.constant 0 : i32
    %c0_i32_0 = arith.constant 0 : i32
    %c0_i32_1 = arith.constant 0 : i32
    return %arg0, %c0_i32, %c0_i32_0 : i32, i32, i32
  }
}

</mosaic_0001>

<bundles_post_ra>
// kernel: tpu_custom_call.1
= control target key start
LH: loop header
LB: loop body
LE: loop exit
PB: predicated region body
PF: predicated region fallthrough
CT: control target
= control target key end

     0   :  { %7 = vsyncpa [#allocation3], 0  ;;  %s572_s0 = inlined_call_operand.vmem [shape: f32[22,16], index: 0, kind: input, shape index: {}]   ;;  %s573_s1 = inlined_call_operand.vmem [shape: s32[22,1], index: 1, kind: input, shape index: {}]   ;;  %s574_s2 = inlined_call_operand.hbm [shape: f32[3,1,128], index: 2, kind: output, shape index: {}]  }
   0x1   :  { %9 = vsyncpa [#allocation3 + $0x1], 0  ;;  %s474_s9 = smov 0   ;;  %s476_s10 = smov 0  }
   0x2   :  { %s478_s11 = smov 0   ;;  %s480_s12 = smov 0  }
   0x3 LB: > { %s495_s13 = sadd.s32 4294967295, %s454_s12   ;;  %s326_s14 = sadd.s32 4294967294, %s454_s12   ;;  %s454_s12 = sphi %s480_s12, %s580_s12   ;;  %s450_s11 = sphi %s478_s11, %s579_s11   ;;  %s446_s10 = sphi %s476_s10, %s578_s10   ;;  %s442_s9 = sphi %s474_s9, %s577_s9  }
   0x4   : > { %s499_s15 = sadd.s32 1, %s454_s12   ;;  %s74_s16 = sadd.s32 1, %s450_s11 }
   0x5   : > { %s71_s17 = ssub.s32 %s454_s12, %s499_s15  ;;  %p84_p0 = scmp.ne.s32.totalorder %s450_s11, %s446_s10 }
   0x6   : > { %p72_p1 = scmp.eq.s32.totalorder %s71_s17, 0  ;;  %p85_p2 = scmp.eq.s32.totalorder %s495_s13, 2 }
   0x7   : > { %p90_p3 = scmp.ne.s32.totalorder %s446_s10, %s442_s9  ;;  %p91_p4 = scmp.eq.s32.totalorder %s326_s14, 2 }
   0x8   : > { %s510_s18 = scalar_select %p72_p1, %s450_s11, %s74_s16  }
   0x9   : > { %p512_p5 = por %p85_p2, %p84_p0  ;;  %p516_p6 = por %p91_p4, %p90_p3 }
   0xa   : > { %p329_p7 = scmp.ge.s32.totalorder %s454_s12, 1  ;;  %p123_p8 = scmp.lt.s32.totalorder %s454_s12, 4 }
   0xc   : > { %p124_p9 = pnand %p329_p7, %p123_p8 }
   0xd   : > { %p147_p10 = scmp.lt.s32.totalorder (!%p124_p9), %s495_s13, 2  ;;  %s332_s29 = sshll.u32 (!%p124_p9), %s495_s13, 3 }
   0xe   : > { %127 = sbr.rel (%p124_p9) target bundleno = 500 (0x1f4), region = 28  ;;  %s145_s30 = sand.u32 (!%p124_p9), 1, %s446_s10  }
   0xf   : > { %s255_s6 = scalar_lea.hbm (!%p124_p9), %s574_s2, %s495_s13  ;;  %s146_s7 = scalar_lea.vmem (!%p124_p9), [#allocation2], %s145_s30 }
  0x10   : > { %s257_s8 = sshll.u32 (!%p124_p9), %s146_s7, 4  ;;  %s259_s14 = sshll.u32 (!%p124_p9), %s255_s6, 4  ;;  %s258_s8 = int_to_ptr.vmem [resolvable:$true] %s257_s8  ;;  %s260_s14 = int_to_ptr.hbm [resolvable:$true] %s259_s14 }
  0x13   : > { %v456_v0 = vmov 0   ;;  %s148_s21 = scalar_select %p147_p10, %s495_s13, 2  ;;  %vm165_vm0 = vcmask 130048   ;;  %v158_v10 = vlaneseq  ;;  %v457_v13 = vmov 0.0  }
  0x14   : > { %385 = vset.pattern.permute.xlu0 %v456_v0  ;;  %v160_v27 = vstv %s332_s29  ;;  %vm202_vm3 = vcmask 7168   ;;  %vm458_vm5 = vmmov 1   ;;  %s247_s13 = scalar_lea.sflag [#allocation3], %s145_s30 }
  0x15   : > { %s330_s22 = sshll.u32 %s148_s21, 3  ;;  %v532_v11 = vand.u32 127, %v158_v10  ;;  %v159_v26 = vshrl.u32 %v158_v10, 7  ;;  %s406_s21 = sshra.s32 %s260_s14, 4  ;;  %s407_s21 = int_to_ptr.hbm [resolvable:$true] %s406_s21 }
  0x16   : > { %s150_s25 = scalar_lea.vmem %s572_s0, %s330_s22  ;;  %s154_s28 = scalar_lea.vmem %s573_s1, %s330_s22 }
  0x17   : > { %v155_v1 = vld [vmem:[%s150_s25] sm:$0xff]  ;;  %v161_v30 = vadd.s32 %v160_v27, %v159_v26  ;;  %vm236_vm8 = vcmp.eq.s32.totalorder %v532_v11, 0  ;;  %vm239_vm9 = vcmp.eq.s32.totalorder %v532_v11, 1  ;;  %vm242_vm10 = vcmp.eq.s32.totalorder %v532_v11, 2  ;;  %s408_s22 = scalar_lea.hbm %s407_s21, 1  ;;  %s412_s25 = scalar_lea.hbm %s574_s2, 3 }
  0x18   : > { %v333_v2 = vclamps-f32 %v155_v1, 10.0  ;;  %v156_v4 = vld [vmem:[%s154_s28] sm:$0xff]  ;;  %p409_p11 = scmp.ne.s32.totalorder %s407_s21, %s408_s22  ;;  %p413_p0 = scmp.lt.s32.totalorder %s407_s21, %s574_s2 }
  0x19   : > { %vm162_vm2 = vcmp.lt.s32.totalorder %v161_v30, 22  ;;  %p414_p1 = scmp.lt.s32.totalorder %s412_s25, %s408_s22 }
  0x1a   : > { %v166_v3 = vsel %vm165_vm0, %v333_v2, -inf  ;;  %p410_p12 = pnand %p409_p11, %p512_p5 }
  0x1b   : > { %167 = vmax.xlane.f32.xlu0 %v166_v3  ;;  %p415_p2 = por %p414_p1, %p413_p0 }
  0x1c   : > { %p411_p13 = pneg %p410_p12 }
  0x1e   : > { %p416_p3 = pnand %p415_p2, %p411_p13 }
  0x2f   : > { %180 = vperm.xlu0 %385, %v156_v4  }
  0x8e   : > { %v168_v5 = vpop.xlane.xlu0 %167 }
  0x8f   : > { %v169_v6 = vsub.f32 %v333_v2, %v168_v5 }
  0x91   : > { %v170_v7 = vmul.f32 1.442695, %v169_v6 }
  0x93   : > { %386 = vpow2.f32 %v170_v7 }
  0x99   : > { %v387_v8 = vpop.eup %386 }
  0x9a   : > { %v172_v9 = vsel %vm165_vm0, %v387_v8, 0.0 }
  0x9b   : > { %173 = vadd.xlane.f32.xlu1 %v172_v9 }
  0xa1   : > { %v181_v12 = vpop.permute.xlu0 %180 }
  0xa2   : > { %vm182_vm1 = vcmp.eq.s32.totalorder %v532_v11, %v181_v12 }
  0xa3   : > { %v334_v14 = vsel %vm182_vm1, 1.0, %v457_v13 }
  0xa4   : > { %v185_v15 = vmul.f32 %v334_v14, %v169_v6 }
  0xa6   : > { %v186_v16 = vsel %vm165_vm0, %v185_v15, 0.0 }
  0xa7   : > { %187 = vadd.xlane.f32.xlu1 %v186_v16 }
 0x10e   : > { %v174_v17 = vpop.xlane.xlu1 %173 }
 0x10f   : > { %388 = vlog2.f32 %v174_v17 }
 0x115   : > { %v389_v18 = vpop.eup %388 }
 0x116   : > { %v176_v19 = vmul.f32 0.6931472, %v389_v18 }
 0x11a   : > { %v188_v20 = vpop.xlane.xlu1 %187 }
 0x11b   : > { %v189_v21 = vsub.f32 %v176_v19, %v188_v20 }
 0x11d   : > { %v190_v22 = vsub.f32 0.0, %v189_v21  ;;  %v213_v38 = vsel %vm162_vm2, %v189_v21, 0.0 }
 0x11e   : > { %v214_v39 = vsel %vm202_vm3, %v213_v38, 0.0 }
 0x11f   : > { %v191_v23 = vmul.f32 1.442695, %v190_v22 }
 0x121   : > { %390 = vpow2.f32 %v191_v23 }
 0x127   : > { %v391_v24 = vpop.eup %390 }
 0x128   : > { %v193_v25 = vmax.f32 %v391_v24, 1e-08 }
 0x12a   : > { %v194_v28 = vmin.f32 %v193_v25, 1.0 }
 0x12c   : > { %v195_v29 = vsub.f32 1.0, %v194_v28 }
 0x12e   : > { %v196_v31 = vmul.f32 %v195_v29, %v195_v29 }
 0x130   : > { %v197_v32 = vmul.f32 %v196_v31, %v189_v21 }
 0x132   : > { %v201_v33 = vsel %vm162_vm2, %v197_v32, 0.0  ;;  %v198_v34 = vand.u32 2147483647, %v197_v32 }
 0x133   : > { %v203_v35 = vsel %vm202_vm3, %v201_v33, 0.0 }
 0x134   : > { %204 = vadd.xlane.f32.xlu2 %v203_v35  ;;  %vm199_vm4 = vcmp.lt.f32.partialorder %v198_v34, inf }
 0x135   : > { %vm200_vm6 = vmxor %vm199_vm4, %vm458_vm5 }
 0x136   : > { %vm224_vm7 = vmand %vm162_vm2, %vm200_vm6 }
 0x137   : > { %v225_v36 = vsel %vm224_vm7, 1.0, %v457_v13 }
 0x138   : > { %v226_v37 = vsel %vm202_vm3, %v225_v36, 0.0 }
 0x139   : > { %227 = vadd.xlane.f32.xlu1 %v226_v37 }
 0x13c   : > { %215 = vadd.xlane.f32.xlu2 %v214_v39 }
 0x1a7   : > { %v205_v40 = vpop.xlane.xlu2 %204 }
 0x1a8   : > { %v206_v41 = vrot.slane %v205_v40, 4 }
 0x1aa   : > { %v207_v42 = vadd.f32 %v206_v41, %v205_v40 }
 0x1ac   : > { %v208_v43 = vrot.slane %v207_v42, 2  ;;  %v228_v44 = vpop.xlane.xlu1 %227 }
 0x1ad   : > { %v229_v45 = vrot.slane %v228_v44, 4 }
 0x1ae   : > { %v209_v46 = vadd.f32 %v208_v43, %v207_v42 }
 0x1af   : > { %v230_v47 = vadd.f32 %v229_v45, %v228_v44  ;;  %v216_v48 = vpop.xlane.xlu2 %215 }
 0x1b0   : > { %v217_v49 = vrot.slane %v216_v48, 4  ;;  %v210_v50 = vrot.slane %v209_v46, 1 }
 0x1b1   : > { %v231_v51 = vrot.slane %v230_v47, 2 }
 0x1b2   : > { %v218_v52 = vadd.f32 %v217_v49, %v216_v48  ;;  %v211_v53 = vadd.f32 %v210_v50, %v209_v46 }
 0x1b3   : > { %v232_v54 = vadd.f32 %v231_v51, %v230_v47 }
 0x1b4   : > { %v219_v55 = vrot.slane %v218_v52, 2  ;;  %337 = vpush %v211_v53 }
 0x1b5   : > { %v233_v57 = vrot.slane %v232_v54, 1 }
 0x1b6   : > { %v220_v56 = vadd.f32 %v219_v55, %v218_v52 }
 0x1b7   : > { %v234_v60 = vadd.f32 %v233_v57, %v232_v54 }
 0x1b8   : > { %v221_v58 = vrot.slane %v220_v56, 1 }
 0x1ba   : > { %v222_v59 = vadd.f32 %v221_v58, %v220_v56 }
 0x1bc   : > { %339 = vpush %v222_v59 }
 0x1bd   : > { %341 = vpush %v234_v60 }
 0x1e5   : > { %s338_s3 = spop %337 }
 0x1e6   : > { %v237_v61 = vstv %s338_s3 }
 0x1e7   : > { %v238_v62 = vsel %vm236_vm8, %v237_v61, 0.0 }
 0x1ed   : > { %s340_s16 = spop %339 }
 0x1ee   : > { %v240_v63 = vstv %s340_s16  ;;  %s342_s17 = spop %341 }
 0x1ef   : > { %v241_v0 = vsel %vm239_vm9, %v240_v63, %v238_v62  ;;  %v243_v1 = vstv %s342_s17 }
 0x1f0   : > { %v244_v2 = vsel %vm242_vm10, %v243_v1, %v241_v0 }
 0x1f1   : > { %245 = vst [vmem:[%s146_s7] sm:$0x1] %v244_v2 }
 0x1f2   : > { %419 = shalt.err (!%p416_p3)
}
 0x1f3   : > { %343 = dma.vmem_to_hbm [thread:$0]  (%p512_p5), %s258_s8, 16, %s260_s14, %s247_s13  }
 0x1f4 PF: > { %p349_p4 = scmp.ge.s32.totalorder %s454_s12, 2  ;;  %s271_s28 = sand.u32 1, %s442_s9  }
 0x1f5   : > { %s272_s29 = scalar_lea.sflag [#allocation3], %s271_s28 }
 0x1f6   : > { %p346_p7 = pnand %p349_p4, %p516_p6 }
 0x1f8   : > { %p347_p8 = pneg %p346_p7 }
 0x1fa   : > { %437 = dma.done.wait (%p347_p8), %s272_s29, 16  }
 0x1fb   : > { %439 = vsyncadd (%p347_p8), %s272_s29, 4294967280  ;;  %p12_p9 = scmp.ge.s32.totalorder %s499_s15, 5   ;;  %s577_s9 = smov %s446_s10 }
 0x1fc   : > { %s578_s10 = smov %s450_s11  ;;  %s579_s11 = smov %s510_s18 }
 0x1fd   : > { %s580_s12 = smov %s499_s15  ;;  %14 = sbr.rel (!%p12_p9) target bundleno = 3 (0x3), region = 66 }
 0x202   :  { %277 = vsyncpa [#allocation3], 1 }
 0x203   :  { %279 = vsyncpa [#allocation3 + $0x1], 1 }

</bundles_post_ra>
